<compile_context>
chip_gen: v5e
topology: v5e:2x2
jax: 0.10.0
libtpu: 0.0.40
codegen_flags: <defaults>
</compile_context>

<pallas_src>
import jax
import jax.numpy as jnp
from jax.experimental import pallas as pl
from jax.experimental.pallas import tpu as pltpu


def _double_kernel(x_ref, o_ref):
    # Elementwise hot path: 2 * x on the current VMEM tile (weak-typed 2
    # preserves the input dtype).
    o_ref[...] = x_ref[...] * 2


_LANE = 1024                       # lane-dense slab width (multiple of 128)
_MAX_TILE_BYTES = 4 << 20          # ~4 MiB/tile; 2 arrays x 2 buffers = 16 MiB
_VMEM_LIMIT_BYTES = 32 * 1024 * 1024  # explicit scoped-VMEM limit (safe on v5e/v6e/v7x)

# Native sublane packing per element size: (8,128) f32, (16,128) bf16, (32,128) int8.
_SUBLANE_BY_ITEMSIZE = {4: 8, 2: 16, 1: 32}


def _pick_tile_rows(rows: int, lane: int, itemsize: int, sublane: int) -> int:
    """Rows per block: as large as the byte budget allows, but split mid-size
    inputs into >=2 (ideally 4) blocks so both v7x TensorCores get work and
    the DMA pipeline has something to overlap."""
    budget_rows = max(1, _MAX_TILE_BYTES // (lane * itemsize))
    tr = max(sublane, (budget_rows // sublane) * sublane)
    if rows > tr:
        return tr
    total_bytes = rows * lane * itemsize
    if total_bytes >= (512 << 10) and rows >= 4 * sublane:
        return max(sublane, (rows // 4 // sublane) * sublane)
    if total_bytes >= (256 << 10) and rows >= 2 * sublane:
        return max(sublane, (rows // 2 // sublane) * sublane)
    return rows  # small input: single full-array block, no pipelining overhead


def _double_2d(x2d: jax.Array, donate: bool = False) -> jax.Array:
    """Run the streaming kernel over a lane-dense (rows, lane) array."""
    rows, lane = x2d.shape
    itemsize = jnp.dtype(x2d.dtype).itemsize
    sublane = _SUBLANE_BY_ITEMSIZE.get(itemsize, 8)
    tile_rows = _pick_tile_rows(rows, lane, itemsize, sublane)
    grid = (pl.cdiv(rows, tile_rows),)   # partial last block is masked by Pallas
    kwargs = {}
    if donate:
        kwargs["input_output_aliases"] = {0: 0}
    return pl.pallas_call(
        _double_kernel,
        out_shape=jax.ShapeDtypeStruct((rows, lane), x2d.dtype),
        grid=grid,
        in_specs=[pl.BlockSpec((tile_rows, lane), lambda i: (i, 0))],
        out_specs=pl.BlockSpec((tile_rows, lane), lambda i: (i, 0)),
        compiler_params=pltpu.CompilerParams(
            dimension_semantics=("parallel",),
            vmem_limit_bytes=_VMEM_LIMIT_BYTES,
        ),
        **kwargs,
    )(x2d)


def _double_small(x2d: jax.Array) -> jax.Array:
    """Single full-array block — for the tiny (<1024-element) ragged tail."""
    return pl.pallas_call(
        _double_kernel,
        out_shape=jax.ShapeDtypeStruct(x2d.shape, x2d.dtype),
    )(x2d)


def double(x: jax.Array, donate: bool = False) -> jax.Array:
    """Compute 2*x with a Pallas TPU kernel. All compute is in-kernel; the
    wrapper only does (copy-free where possible) reshape glue."""
    orig_shape = x.shape
    n = int(x.size)
    if n == 0:
        return x

    itemsize = jnp.dtype(x.dtype).itemsize
    sublane = _SUBLANE_BY_ITEMSIZE.get(itemsize, 8)

    # Fast path 1: size divisible by the 1024-lane slab -> free reshape,
    # no pad, no output slice.
    if n % _LANE == 0:
        out = _double_2d(x.reshape(n // _LANE, _LANE), donate)
        return out.reshape(orig_shape)

    # Fast path 2: collapsed trailing dim already lane-dense (multiple of 128)
    # and one sublane row-group fits the tile budget -> use the natural
    # (prod(leading), C) view directly.
    if x.ndim >= 2:
        c = orig_shape[-1]
        if c % 128 == 0 and sublane * c * itemsize <= _MAX_TILE_BYTES:
            out = _double_2d(x.reshape(-1, c), donate)
            return out.reshape(orig_shape)

    # Ragged path: stream the bulk (full 1024-wide rows) unpadded, fix up the
    # <1024-element tail with a tiny full-block call.  No full-array pad/slice.
    flat = x.reshape(-1)
    bulk_rows = n // _LANE
    bulk_n = bulk_rows * _LANE
    pieces = []
    if bulk_rows:
        bulk = flat[:bulk_n].reshape(bulk_rows, _LANE)
        pieces.append(_double_2d(bulk).reshape(-1))
    tail_len = n - bulk_n
    if tail_len:
        tail = flat[bulk_n:].reshape(1, tail_len)
        pieces.append(_double_small(tail).reshape(-1))
    out_flat = pieces[0] if len(pieces) == 1 else jnp.concatenate(pieces)
    return out_flat.reshape(orig_shape)


if __name__ == "__main__":
    key = jax.random.PRNGKey(0)
    # Small NCHW-style input consistent with a generic forward pass.
    x = jax.random.normal(key, (2, 4, 16, 16), dtype=jnp.float32)

    y = double(x)
    jax.block_until_ready(y)
    assert y.shape == x.shape and y.dtype == x.dtype
    assert jnp.array_equal(y, 2.0 * x), "mismatch vs reference (main path)"

    # Exercise the lane-dense natural-view path (trailing dim multiple of 128).
    x2 = jax.random.normal(jax.random.PRNGKey(1), (3, 384), dtype=jnp.float32)
    y2 = double(x2)
    jax.block_until_ready(y2)
    assert jnp.array_equal(y2, 2.0 * x2), "mismatch vs reference (natural view)"

    # Exercise the ragged bulk+tail path (size not a multiple of 1024).
    x3 = jax.random.normal(jax.random.PRNGKey(2), (3, 345), dtype=jnp.float32)
    y3 = double(x3)
    jax.block_until_ready(y3)
    assert jnp.array_equal(y3, 2.0 * x3), "mismatch vs reference (ragged)"

    print("KERNEL_OK")
</pallas_src>

<mosaic_0001>
module attributes {stable_mosaic.version = 11 : i64} {
  func.func @_double_kernel(%arg0: i32, %arg1: memref<2x1024xf32, #tpu.memory_space<vmem>>, %arg2: memref<2x1024xf32, #tpu.memory_space<vmem>>) attributes {dimension_semantics = [#tpu.dimension_semantics<parallel>], iteration_bounds = array<i64: 1>, scalar_prefetch = 0 : i64, scratch_operands = 0 : i64, tpu.core_type = #tpu.core_type<tc>, window_params = [{transform_indices = @transform_0, window_bounds = array<i64: 2, 1024>}, {transform_indices = @transform_1, window_bounds = array<i64: 2, 1024>}]} {
    %c0 = arith.constant 0 : index
    %c0_0 = arith.constant 0 : index
    %0 = vector.load %arg1[%c0, %c0_0] : memref<2x1024xf32, #tpu.memory_space<vmem>>, vector<2x1024xf32>
    %cst = arith.constant 2.000000e+00 : f32
    %1 = vector.broadcast %cst : f32 to vector<2x1024xf32>
    %2 = arith.mulf %0, %1 : vector<2x1024xf32>
    %c0_1 = arith.constant 0 : index
    %c0_2 = arith.constant 0 : index
    %3 = vector.load %arg2[%c0_1, %c0_2] : memref<2x1024xf32, #tpu.memory_space<vmem>>, vector<2x1024xf32>
    tpu.vector_store %arg2[%c0_1, %c0_2], %2 {strides = array<i32>} : memref<2x1024xf32, #tpu.memory_space<vmem>>, vector<2x1024xf32>,
    return
  }
  func.func @transform_0(%arg0: i32) -> (i32, i32) {
    %c0_i32 = arith.constant 0 : i32
    %c0_i32_0 = arith.constant 0 : i32
    return %arg0, %c0_i32 : i32, i32
  }
  func.func @transform_1(%arg0: i32) -> (i32, i32) {
    %c0_i32 = arith.constant 0 : i32
    %c0_i32_0 = arith.constant 0 : i32
    return %arg0, %c0_i32 : i32, i32
  }
}

</mosaic_0001>

<bundles_post_ra>
// kernel: tpu_custom_call.1
= control target key start
LH: loop header
LB: loop body
LE: loop exit
PB: predicated region body
PF: predicated region fallthrough
CT: control target
= control target key end

     0   :  { %6 = vsyncpa [#allocation3], 0  ;;  %s118_s0 = inlined_call_operand.hbm [shape: f32[2,1024], index: 0, kind: input, shape index: {}]   ;;  %s119_s1 = inlined_call_operand.hbm [shape: f32[2,1024], index: 1, kind: output, shape index: {}]  }
   0x1   :  { %7 = vsyncpa [#allocation4], 0  ;;  %s13_s8 = sshll.u32 %s118_s0, 4  ;;  %s100_s9 = smov [#allocation2]   ;;  %s14_s8 = int_to_ptr.hbm [resolvable:$true] %s13_s8 }
   0x2   :  { %s15_s10 = sshll.u32 %s100_s9, 4  ;;  %s16_s10 = int_to_ptr.vmem [resolvable:$true] %s15_s10 }
   0x3   :  { %18 = dma.hbm_to_vmem [thread:$0]  %s14_s8, 256, %s16_s10, [#allocation3]  }
   0x4   :  { %96 = dma.done.wait [#allocation3], 256  }
   0x5   :  { %97 = vsyncadd [#allocation3], 4294967040  ;;  %s101_s11 = smov [#allocation5]   ;;  %s36_s15 = sshll.u32 %s119_s1, 4  ;;  %v23_v0 = vld [vmem:[#allocation2] sm:$0xff]  ;;  %v24_v1 = vld [vmem:[#allocation2 + $0x8] sm:$0xff]  ;;  %s37_s15 = int_to_ptr.hbm [resolvable:$true] %s36_s15 }
   0x6   :  { %s34_s12 = sshll.u32 %s101_s11, 4  ;;  %v25_v2 = vmul.f32 2.0, %v23_v0  ;;  %v26_v3 = vmul.f32 2.0, %v24_v1  ;;  %s35_s12 = int_to_ptr.vmem [resolvable:$true] %s34_s12 }
   0x8   :  { %27 = vst [vmem:[#allocation5] sm:$0xff] %v25_v2 }
   0x9   :  { %28 = vst [vmem:[#allocation5 + $0x8] sm:$0xff] %v26_v3 }
   0xa   :  { %39 = dma.vmem_to_hbm [thread:$0]  %s35_s12, 256, %s37_s15, [#allocation4]  }
   0xb   :  { %98 = dma.done.wait [#allocation4], 256  }
   0xc   :  { %99 = vsyncadd [#allocation4], 4294967040 }
   0xd   :  { %44 = vsyncpa [#allocation3], 1 }
   0xe   :  { %45 = vsyncpa [#allocation4], 1 }

</bundles_post_ra>
